<compile_context>
chip_gen: v7x
topology: tpu7x:2x2x1
jax: 0.10.0
libtpu: 0.0.40
codegen_flags: <defaults>
</compile_context>

<pallas_src>
import functools

import jax
import jax.numpy as jnp
from jax import lax
from jax.experimental import pallas as pl
from jax.experimental.pallas import tpu as pltpu

Z_DIM = 2
OUT_DIM = 2            # nn.Linear(z_dim, 2)

_LANES = 512           # lane width of the flattened slab (multiple of 128)
_ROW_TILE_CAP = 1024   # rows per grid step: 1024 * 512 * 4 B = 2 MiB per block


def _linear2_kernel(p_ref, x_ref, o_ref):
    """y = x @ W.T + b for in=out=2, on an interleaved lane-dense slab.

    p_ref: SMEM f32[6] = [W00, W01, W10, W11, b0, b1]   (PyTorch Linear layout)
    x_ref: VMEM (row_tile, LANES) -- zero-copy view of x:(B, 2); even lanes hold
           a sample's z0, the adjacent odd lane holds its z1.
    o_ref: VMEM (row_tile, LANES) -- same interleaving for (y0, y1).
    """
    x = x_ref[...].astype(jnp.float32)
    rows, lanes = x.shape

    lane = lax.broadcasted_iota(jnp.int32, (rows, lanes), 1)
    is_even = (lane & 1) == 0

    # Pair swap: partner[l] = x[l ^ 1]  (z1 for even lanes, z0 for odd lanes).
    # Two static lane rotations (XLU slot, free under the mem-bound roofline).
    # The probe on `lane` makes the even/odd selection independent of the
    # rotation-direction convention; pairs never straddle a row (LANES even),
    # so wrap-around lanes only ever appear in the discarded select branch.
    r = pltpu.roll(x, 1, axis=1)
    s = pltpu.roll(x, lanes - 1, axis=1)
    r_lane = pltpu.roll(lane, 1, axis=1)
    r_is_prev = r_lane == ((lane - 1) & (lanes - 1))   # uniformly True / False
    partner = jnp.where(is_even == r_is_prev, s, r)

    w00 = p_ref[0]
    w01 = p_ref[1]
    w10 = p_ref[2]
    w11 = p_ref[3]
    b0 = p_ref[4]
    b1 = p_ref[5]

    c_self = jnp.where(is_even, w00, w11)   # coefficient of the lane's own value
    c_pair = jnp.where(is_even, w01, w10)   # coefficient of its pair partner
    c_bias = jnp.where(is_even, b0, b1)

    # Single dense, unmasked (row_tile, LANES) store of the interleaved output.
    o_ref[...] = (x * c_self + partner * c_pair + c_bias).astype(o_ref.dtype)


def _row_tile(num_rows, cap):
    """Rows per grid step: big tiles, but >=2 grid steps when possible (v7x TCs)."""
    if num_rows <= 15:
        return num_rows                            # one block; block dim == full dim
    if num_rows <= cap:
        return (-(-num_rows // 2) + 7) // 8 * 8    # ~half the rows, multiple of 8
    return cap


@functools.partial(jax.jit, static_argnames=("use_pallas", "lanes", "row_tile_cap"))
def generator_forward(x, weight, bias, *, use_pallas=None,
                      lanes=_LANES, row_tile_cap=_ROW_TILE_CAP):
    """Pallas equivalent of Generator.forward (a single nn.Linear(2, 2)).

    x: (B, 2), weight: (2, 2) in PyTorch layout, bias: (2,) -> returns (B, 2).
    """
    B, z_in = x.shape
    assert z_in == Z_DIM and weight.shape == (OUT_DIM, Z_DIM)
    assert bias.shape == (OUT_DIM,)
    assert lanes % 128 == 0 and lanes & (lanes - 1) == 0

    if use_pallas is None:
        use_pallas = B >= 4096
    if not use_pallas:
        # Tiny batches: fused XLA beats any Pallas launch + wrapper ops.
        y = (x.astype(jnp.float32) @ weight.astype(jnp.float32).T
             + bias.astype(jnp.float32))
        return y.astype(x.dtype)

    # [W00, W01, W10, W11, b0, b1] as 1-D SMEM scalars (no 2-D SMEM padding).
    params = jnp.concatenate([weight.astype(jnp.float32).reshape(-1),
                              bias.astype(jnp.float32).reshape(-1)])

    # Zero-copy reinterpretation of the contiguous (B, 2) storage as a
    # lane-dense (R, lanes) slab; pad the flat tail only if 2*B % lanes != 0.
    flat = x.reshape(-1)
    n = flat.shape[0]                     # 2 * B
    n_pad = -(-n // lanes) * lanes
    if n_pad != n:
        flat = jnp.pad(flat, (0, n_pad - n))
    num_rows = n_pad // lanes
    slab = flat.reshape(num_rows, lanes)

    tr = _row_tile(num_rows, row_tile_cap)
    grid = (pl.cdiv(num_rows, tr),)       # remainder rows handled by edge masking

    y_slab = pl.pallas_call(
        _linear2_kernel,
        out_shape=jax.ShapeDtypeStruct((num_rows, lanes), x.dtype),
        grid_spec=pltpu.PrefetchScalarGridSpec(
            num_scalar_prefetch=0,
            grid=grid,
            in_specs=[
                pl.BlockSpec(memory_space=pltpu.MemorySpace.SMEM),   # params
                pl.BlockSpec((tr, lanes), lambda i: (i, 0)),         # x slab
            ],
            out_specs=pl.BlockSpec((tr, lanes), lambda i: (i, 0)),   # y slab
        ),
        compiler_params=pltpu.CompilerParams(
            dimension_semantics=("parallel",),     # batch tiles are independent
            vmem_limit_bytes=32 * 1024 * 1024,     # headroom; ~8 MiB actually used
        ),
    )(params, slab)

    y_flat = y_slab.reshape(-1)
    if n_pad != n:
        y_flat = y_flat[:n]
    return y_flat.reshape(B, OUT_DIM)     # zero-copy back to PyTorch (B, 2) layout


def init_generator_params(key, z_dim=Z_DIM, out_dim=OUT_DIM):
    """nn.Linear-style init: W (out, in), b (out,), uniform(-1/sqrt(in), 1/sqrt(in))."""
    kw, kb = jax.random.split(key)
    bound = 1.0 / jnp.sqrt(jnp.float32(z_dim))
    weight = jax.random.uniform(kw, (out_dim, z_dim), jnp.float32, -bound, bound)
    bias = jax.random.uniform(kb, (out_dim,), jnp.float32, -bound, bound)
    return weight, bias


if __name__ == "__main__":
    key = jax.random.PRNGKey(0)
    k_params, k_data = jax.random.split(key)
    weight, bias = init_generator_params(k_params)

    # batch=2   : tiny single-row block (R=1), flat-tail padding path
    # batch=300 : padding path, single block
    # batch=4608: no padding, 2-step "parallel" grid with a masked edge block
    for batch in (2, 300, 4608):
        kx = jax.random.fold_in(k_data, batch)
        x = jax.random.normal(kx, (batch, Z_DIM), jnp.float32)
        y = jax.block_until_ready(
            generator_forward(x, weight, bias, use_pallas=True))
        y_ref = x @ weight.T + bias
        assert y.shape == (batch, OUT_DIM)
        assert jnp.allclose(y, y_ref, atol=1e-5, rtol=1e-5), f"mismatch at B={batch}"

    print("KERNEL_OK")
</pallas_src>

<mosaic_0001>
module attributes {stable_mosaic.version = 11 : i64} {
  func.func @_linear2_kernel(%arg0: i32, %arg1: memref<6xf32, #tpu.memory_space<smem>>, %arg2: memref<1x512xf32, #tpu.memory_space<vmem>>, %arg3: memref<1x512xf32, #tpu.memory_space<vmem>>) attributes {dimension_semantics = [#tpu.dimension_semantics<parallel>], iteration_bounds = array<i64: 1>, scalar_prefetch = 0 : i64, scratch_operands = 0 : i64, tpu.core_type = #tpu.core_type<tc>, window_params = [{transform_indices = @transform_0, window_bounds = array<i64: 6>}, {transform_indices = @transform_1, window_bounds = array<i64: 1, 512>}, {transform_indices = @transform_2, window_bounds = array<i64: 1, 512>}]} {
    %c0 = arith.constant 0 : index
    %c0_0 = arith.constant 0 : index
    %0 = vector.load %arg2[%c0, %c0_0] : memref<1x512xf32, #tpu.memory_space<vmem>>, vector<1x512xf32>
    %1 = tpu.iota {dimensions = array<i32: 1>} : vector<1x512xi32>
    %c1_i32 = arith.constant 1 : i32
    %2 = vector.broadcast %c1_i32 : i32 to vector<1x512xi32>
    %3 = arith.andi %1, %2 : vector<1x512xi32>
    %c0_i32 = arith.constant 0 : i32
    %4 = vector.broadcast %c0_i32 : i32 to vector<1x512xi32>
    %5 = arith.cmpi eq, %3, %4 : vector<1x512xi32>
    %c1_i32_1 = arith.constant 1 : i32
    %6 = tpu.dynamic_rotate %0 by %c1_i32_1 dim 1 : vector<1x512xf32>, i32 -> vector<1x512xf32>
    %c511_i32 = arith.constant 511 : i32
    %7 = tpu.dynamic_rotate %0 by %c511_i32 dim 1 : vector<1x512xf32>, i32 -> vector<1x512xf32>
    %c1_i32_2 = arith.constant 1 : i32
    %8 = tpu.dynamic_rotate %1 by %c1_i32_2 dim 1 : vector<1x512xi32>, i32 -> vector<1x512xi32>
    %c1_i32_3 = arith.constant 1 : i32
    %9 = vector.broadcast %c1_i32_3 : i32 to vector<1x512xi32>
    %10 = arith.subi %1, %9 : vector<1x512xi32>
    %c511_i32_4 = arith.constant 511 : i32
    %11 = vector.broadcast %c511_i32_4 : i32 to vector<1x512xi32>
    %12 = arith.andi %10, %11 : vector<1x512xi32>
    %13 = arith.cmpi eq, %8, %12 : vector<1x512xi32>
    %14 = arith.xori %5, %13 : vector<1x512xi1>
    %cst = arith.constant dense<true> : vector<1x512xi1>
    %15 = arith.xori %14, %cst : vector<1x512xi1>
    %16 = arith.select %15, %7, %6 : vector<1x512xi1>, vector<1x512xf32>
    %c0_5 = arith.constant 0 : index
    %17 = memref.load %arg1[%c0_5] : memref<6xf32, #tpu.memory_space<smem>>
    %c1 = arith.constant 1 : index
    %18 = memref.load %arg1[%c1] : memref<6xf32, #tpu.memory_space<smem>>
    %c2 = arith.constant 2 : index
    %19 = memref.load %arg1[%c2] : memref<6xf32, #tpu.memory_space<smem>>
    %c3 = arith.constant 3 : index
    %20 = memref.load %arg1[%c3] : memref<6xf32, #tpu.memory_space<smem>>
    %c4 = arith.constant 4 : index
    %21 = memref.load %arg1[%c4] : memref<6xf32, #tpu.memory_space<smem>>
    %c5 = arith.constant 5 : index
    %22 = memref.load %arg1[%c5] : memref<6xf32, #tpu.memory_space<smem>>
    %23 = vector.broadcast %17 : f32 to vector<1x512xf32>
    %24 = vector.broadcast %20 : f32 to vector<1x512xf32>
    %25 = arith.select %5, %23, %24 : vector<1x512xi1>, vector<1x512xf32>
    %26 = vector.broadcast %18 : f32 to vector<1x512xf32>
    %27 = vector.broadcast %19 : f32 to vector<1x512xf32>
    %28 = arith.select %5, %26, %27 : vector<1x512xi1>, vector<1x512xf32>
    %29 = vector.broadcast %21 : f32 to vector<1x512xf32>
    %30 = vector.broadcast %22 : f32 to vector<1x512xf32>
    %31 = arith.select %5, %29, %30 : vector<1x512xi1>, vector<1x512xf32>
    %32 = arith.mulf %0, %25 : vector<1x512xf32>
    %33 = arith.mulf %16, %28 : vector<1x512xf32>
    %34 = arith.addf %32, %33 : vector<1x512xf32>
    %35 = arith.addf %34, %31 : vector<1x512xf32>
    %c0_6 = arith.constant 0 : index
    %c0_7 = arith.constant 0 : index
    %36 = vector.load %arg3[%c0_6, %c0_7] : memref<1x512xf32, #tpu.memory_space<vmem>>, vector<1x512xf32>
    tpu.vector_store %arg3[%c0_6, %c0_7], %35 {strides = array<i32>} : memref<1x512xf32, #tpu.memory_space<vmem>>, vector<1x512xf32>,
    return
  }
  func.func @transform_0(%arg0: i32) -> i32 {
    %c0_i32 = arith.constant 0 : i32
    %c0_i32_0 = arith.constant 0 : i32
    return %c0_i32 : i32
  }
  func.func @transform_1(%arg0: i32) -> (i32, i32) {
    %c0_i32 = arith.constant 0 : i32
    %c0_i32_0 = arith.constant 0 : i32
    return %arg0, %c0_i32 : i32, i32
  }
  func.func @transform_2(%arg0: i32) -> (i32, i32) {
    %c0_i32 = arith.constant 0 : i32
    %c0_i32_0 = arith.constant 0 : i32
    return %arg0, %c0_i32 : i32, i32
  }
}

</mosaic_0001>

<bundles_post_ra>
// kernel: generator_forward.1
= control target key start
LH: loop header
LB: loop body
LE: loop exit
PB: predicated region body
PF: predicated region fallthrough
CT: control target
= control target key end

     0   :  { %7 = vsyncpa [#allocation3], 0  ;;  %s462_s0 = inlined_call_operand.vmem [shape: f32[6], index: 0, kind: input, shape index: {}]   ;;  %s463_s1 = inlined_call_operand.vmem [shape: f32[1,512], index: 1, kind: input, shape index: {}]   ;;  %s464_s2 = inlined_call_operand.vmem [shape: f32[1,512], index: 2, kind: output, shape index: {}]  }
   0x1   :  { %s14_s11 = sshll.u32 %s462_s0, 4  ;;  %s15_s11 = int_to_ptr.vmem [resolvable:$true] %s14_s11 }
   0x2   :  { %s263_s12 = scalar_lea.vmem %s15_s11, 16  ;;  %p268_p1 = scmp.lt.s32.totalorder %s15_s11, %s15_s11 }
   0x3   :  { %p264_p0 = scmp.ne.s32.totalorder %s15_s11, %s263_s12  ;;  %p269_p2 = scmp.lt.s32.totalorder %s263_s12, %s263_s12 }
   0x5   :  { %p270_p3 = por %p269_p2, %p268_p1 }
   0x7   :  { %p271_p4 = pnand %p270_p3, %p264_p0 }
   0x9   :  { %274 = shalt.err (!%p271_p4)
}
   0xa   :  { %s277_s13 = smov [#allocation2]  }
   0xb   :  { %17 = dma.vmem_to_smem %s15_s11, 16, %s277_s13, [#allocation3]  }
   0xc   :  { %275 = dma.done.wait [#allocation3], 16  }
   0xd   :  { %276 = vsyncadd [#allocation3], 4294967280 }
   0xe   :  { %23 = sfence }
   0xf   :  { %v25_v0 = vlaneseq  ;;  %v278_v1 = vmov 1966171168   ;;  %s121_s14 = sld [smem:[#allocation2]]  ;;  %s255_s15 = sld [smem:[#allocation2 + $0x3]]  ;;  %v24_v8 = vld [vmem:[%s463_s1] sm:$0xf] }
  0x10   :  { %v152_v2 = vunpack.c.l.s4 %v278_v1  ;;  %s256_s0 = sld [smem:[#allocation2 + $0x4]]  ;;  %s257_s16 = sld [smem:[#allocation2 + $0x5]]  ;;  %vm281_vm14 = vmmov 1  }
  0x11   :  { %v301_v3 = vand.u32 127, %v25_v0  ;;  %v40_v4 = vshrl.u32 %v25_v0, 7  ;;  %s279_s17 = smov 1   ;;  %s280_s1 = smov 127  }
  0x12   :  { %v153_v9 = vunpack.c.0.s8 %v152_v2  ;;  %s253_s20 = sld [smem:[#allocation2 + $0x1]]  ;;  %s254_s21 = sld [smem:[#allocation2 + $0x2]] }
  0x13   :  { %85 = vrot.lane.b32.xlu0 %v301_v3, %s279_s17  ;;  %v28_v5 = vadd.s32 256, %v301_v3  ;;  %v27_v6 = vadd.s32 128, %v301_v3  ;;  %v41_v7 = vsub.s32 0, %v40_v4  ;;  %v29_v10 = vadd.s32 384, %v301_v3 }
  0x14   :  { %v45_v11 = vsub.s32 1, %v40_v4  ;;  %v49_v13 = vsub.s32 2, %v40_v4  ;;  %v314_v18 = vsub.s32 %v153_v9, %v40_v4  ;;  %v53_v19 = vsub.s32 3, %v40_v4 }
  0x15   :  { %89 = vrot.lane.b32.xlu1 %v28_v5, %s279_s17  ;;  %v32_v12 = vand.u32 1, %v28_v5  ;;  %v42_v14 = vrot.slane %v24_v8, %v41_v7  ;;  %v127_v15 = vstv %s121_s14  ;;  %v128_v16 = vstv %s255_s15 }
  0x16   :  { %v139_v17 = vstv %s256_s0  ;;  %v140_v20 = vstv %s257_s16  ;;  %v31_v21 = vand.u32 1, %v27_v6  ;;  %v46_v22 = vrot.slane %v24_v8, %v45_v11 }
  0x17   :  { %87 = vrot.lane.b32.xlu0 %v27_v6, %s279_s17  ;;  %vm317_vm0 = vcmp.eq.s32.totalorder %v32_v12, 0  ;;  %v30_v24 = vand.u32 1, %v301_v3  ;;  %v33_v25 = vand.u32 1, %v29_v10  ;;  %v50_v26 = vrot.slane %v24_v8, %v49_v13 }
  0x18   :  { %v131_v27 = vsel %vm317_vm0, %v127_v15, %v128_v16  ;;  %v143_v28 = vsel %vm317_vm0, %v139_v17, %v140_v20  ;;  %vm326_vm1 = vcmp.eq.s32.totalorder %v31_v21, 0  ;;  %v54_v34 = vrot.slane %v24_v8, %v53_v19 }
  0x19   :  { %91 = vrot.lane.b32.xlu1 %v29_v10, %s279_s17  ;;  %v130_v30 = vsel %vm326_vm1, %v127_v15, %v128_v16  ;;  %v142_v31 = vsel %vm326_vm1, %v139_v17, %v140_v20  ;;  %vm335_vm2 = vcmp.eq.s32.totalorder %v30_v24, 0  ;;  %vm339_vm3 = vcmp.eq.s32.totalorder %v33_v25, 0 }
  0x1a   :  { %v129_v35 = vsel %vm335_vm2, %v127_v15, %v128_v16  ;;  %v132_v36 = vsel %vm339_vm3, %v127_v15, %v128_v16  ;;  %v141_v37 = vsel %vm335_vm2, %v139_v17, %v140_v20  ;;  %v144_v38 = vsel %vm339_vm3, %v139_v17, %v140_v20 }
  0x1b   :  { %59 = vrot.lane.b32.xlu0 %v42_v14, %s279_s17  ;;  %v149_v39 = vcombine.low %v129_v35, %v130_v30  ;;  %v150_v40 = vcombine.low %v131_v27, %v132_v36  ;;  %v213_v41 = vcombine.low %v141_v37, %v142_v31  ;;  %v214_v42 = vcombine.low %v143_v28, %v144_v38 }
  0x1c   :  { %v251_v52 = vadd.s32 4294967295, %v28_v5  ;;  %v250_v53 = vadd.s32 4294967295, %v27_v6  ;;  %v252_v55 = vadd.s32 4294967295, %v29_v10  ;;  %vm67_vm4 = vcmp.lt.s32.totalorder %v301_v3, 1 }
  0x1d   :  { %61 = vrot.lane.b32.xlu1 %v46_v22, %s279_s17  ;;  %v157_v43 = vrot.slane %v149_v39, %v314_v18  ;;  %v164_v44 = vrot.slane %v150_v40, %v314_v18  ;;  %v221_v45 = vrot.slane %v213_v41, %v314_v18  ;;  %v228_v46 = vrot.slane %v214_v42, %v314_v18 }
  0x1e   :  { %v103_v57 = vand.u32 511, %v251_v52  ;;  %v102_v58 = vand.u32 511, %v250_v53  ;;  %v104_v60 = vand.u32 511, %v252_v55  ;;  %v249_v63 = vadd.s32 4294967295, %v301_v3 }
  0x1f   :  { %63 = vrot.lane.b32.xlu0 %v50_v26, %s279_s17  ;;  %v165_v47 = vcombine.low %v157_v43, %v164_v44  ;;  %v358_v48 = vcombine.low %v221_v45, %v228_v46  ;;  %vm80_vm13 = vcmp.lt.s32.totalorder %v301_v3, 127  ;;  %v134_v15 = vstv %s254_s21 }
  0x21   :  { %65 = vrot.lane.b32.xlu1 %v54_v34, %s279_s17  ;;  %v172_v49 = vrot.slane %v165_v47, %v314_v18  ;;  %v236_v50 = vrot.slane %v358_v48, %v314_v18 }
  0x23   :  { %72 = vrot.lane.b32.xlu0 %v42_v14, %s280_s1  ;;  %v363_v51 = vmul.f32 %v172_v49, %v24_v8  ;;  %v101_v8 = vand.u32 511, %v249_v63  ;;  %v133_v14 = vstv %s253_s20 }
  0x24   :  { %v135_v21 = vsel %vm335_vm2, %v133_v14, %v134_v15  ;;  %v136_v24 = vsel %vm326_vm1, %v133_v14, %v134_v15  ;;  %v137_v28 = vsel %vm317_vm0, %v133_v14, %v134_v15  ;;  %v138_v32 = vsel %vm339_vm3, %v133_v14, %v134_v15 }
  0x25   :  { %74 = vrot.lane.b32.xlu1 %v46_v22, %s280_s1 }
  0x27   :  { %76 = vrot.lane.b32.xlu0 %v50_v26, %s280_s1 }
  0x29   :  { %78 = vrot.lane.b32.xlu1 %v54_v34, %s280_s1 }
  0x85   :  { %v86_v54 = vpop.permute.xlu0 %85 }
  0x87   :  { %v90_v56 = vpop.permute.xlu1 %89 }
  0x89   :  { %v88_v59 = vpop.permute.xlu0 %87 }
  0x8a   :  { %v94_v61 = vsel %vm67_vm4, %v88_v59, %v90_v56  ;;  %v95_v62 = vsel %vm67_vm4, %v86_v54, %v88_v59 }
  0x8b   :  { %vm371_vm5 = vcmp.eq.s32.totalorder %v95_v62, %v102_v58  ;;  %vm375_vm6 = vcmp.eq.s32.totalorder %v94_v61, %v103_v57  ;;  %v92_v4 = vpop.permute.xlu1 %91 }
  0x8c   :  { %vm110_vm7 = vmxor %vm326_vm1, %vm371_vm5  ;;  %v93_v5 = vsel %vm67_vm4, %v90_v56, %v92_v4  ;;  %v96_v9 = vsel %vm67_vm4, %v92_v4, %v86_v54 }
  0x8d   :  { %vm111_vm8 = vmxor %vm317_vm0, %vm375_vm6  ;;  %vm389_vm9 = vcmp.eq.s32.totalorder %v93_v5, %v104_v60  ;;  %v60_v7 = vpop.permute.xlu0 %59  ;;  %vm105_vm11 = vcmp.eq.s32.totalorder %v96_v9, %v101_v8  ;;  %vm241_vm0 = vcmp.lt.s32.totalorder %v25_v0, 512 }
  0x8e   :  { %vm112_vm10 = vmxor %vm339_vm3, %vm389_vm9 }
  0x8f   :  { %v62_v10 = vpop.permute.xlu1 %61  ;;  %vm109_vm12 = vmxor %vm335_vm2, %vm105_vm11 }
  0x90   :  { %vm403_vm15 = vmxor %vm109_vm12, %vm281_vm14  ;;  %v70_v26 = vsel %vm67_vm4, %v60_v7, %v62_v10 }
  0x91   :  { %v64_v11 = vpop.permute.xlu0 %63  ;;  %vm114_vm11 = vmxor %vm110_vm7, %vm281_vm14 }
  0x92   :  { %vm115_vm2 = vmxor %vm111_vm8, %vm281_vm14  ;;  %v69_v29 = vsel %vm67_vm4, %v62_v10, %v64_v11 }
  0x93   :  { %v66_v12 = vpop.permute.xlu1 %65  ;;  %vm116_vm1 = vmxor %vm112_vm10, %vm281_vm14 }
  0x94   :  { %v71_v19 = vsel %vm67_vm4, %v66_v12, %v60_v7  ;;  %v68_v30 = vsel %vm67_vm4, %v64_v11, %v66_v12 }
  0x95   :  { %v73_v13 = vpop.permute.xlu0 %72 }
  0x97   :  { %v75_v16 = vpop.permute.xlu1 %74 }
  0x98   :  { %v83_v20 = vsel %vm80_vm13, %v73_v13, %v75_v16 }
  0x99   :  { %v117_v22 = vsel %vm403_vm15, %v83_v20, %v71_v19  ;;  %v77_v25 = vpop.permute.xlu0 %76 }
  0x9a   :  { %v82_v27 = vsel %vm80_vm13, %v75_v16, %v77_v25  ;;  %v175_v23 = vmul.f32 %v135_v21, %v117_v22 }
  0x9b   :  { %v118_v31 = vsel %vm114_vm11, %v82_v27, %v70_v26  ;;  %v79_v34 = vpop.permute.xlu1 %78 }
  0x9c   :  { %v176_v35 = vmul.f32 %v136_v24, %v118_v31  ;;  %v81_v36 = vsel %vm80_vm13, %v77_v25, %v79_v34  ;;  %v84_v37 = vsel %vm80_vm13, %v79_v34, %v73_v13 }
  0x9d   :  { %v119_v38 = vsel %vm115_vm2, %v81_v36, %v69_v29  ;;  %v120_v39 = vsel %vm116_vm1, %v84_v37, %v68_v30 }
  0x9e   :  { %v183_v40 = vcombine.low %v175_v23, %v176_v35  ;;  %v177_v41 = vmul.f32 %v137_v28, %v119_v38  ;;  %v178_v42 = vmul.f32 %v138_v32, %v120_v39 }
  0xa0   :  { %v191_v43 = vrot.slane %v183_v40, %v314_v18  ;;  %v184_v33 = vcombine.low %v177_v41, %v178_v42 }
  0xa2   :  { %v198_v44 = vrot.slane %v184_v33, %v314_v18 }
  0xa4   :  { %v199_v45 = vcombine.low %v191_v43, %v198_v44 }
  0xa6   :  { %v206_v46 = vrot.slane %v199_v45, %v314_v18 }
  0xa8   :  { %v208_v47 = vadd.f32 %v206_v46, %v363_v51 }
  0xaa   :  { %v238_v3 = vadd.f32 %v236_v50, %v208_v47 }
  0xac   :  { %243 = vst.msk [vmem:[%s464_s2] sm:$0xf] %vm241_vm0, %v238_v3 }
  0xad   :  { %248 = vsyncpa [#allocation3], 1 }

</bundles_post_ra>
